<compile_context>
chip_gen: v7x
topology: tpu7x:2x2x1
jax: 0.10.0
libtpu: 0.0.40
codegen_flags: <defaults>
</compile_context>

<pallas_src>
import functools

import jax
import jax.numpy as jnp
from jax.experimental import pallas as pl
from jax.experimental.pallas import tpu as pltpu


# --------------------------- Pallas kernel ----------------------------------

def _fused_head_kernel(x_ref, w_ref, b_ref, out_ref):
    # x_ref:  (tile_b, H)      batch tile
    # w_ref:  (H, C_PAD)       folded weight, VMEM-resident across grid steps
    # b_ref:  (1, C_PAD)       folded bias (-1e30 on padded classes)
    # out_ref:(tile_b, C_PAD)  lane-dense (C_PAD multiple of 128)
    # TODO(synk): nn.Dropout is identity in inference mode; training-mode RNG
    # dropout after each Linear is not modeled.
    logits = jnp.dot(x_ref[...], w_ref[...],
                     preferred_element_type=jnp.float32) + b_ref[...]

    # Numerically-stable softmax over the class (lane) axis.  Padded classes
    # carry a -1e30 bias -> exp(...) underflows to exactly 0.
    m = jnp.max(logits, axis=-1, keepdims=True)
    e = jnp.exp(logits - m)
    s = jnp.sum(e, axis=-1, keepdims=True)
    out_ref[...] = e * pl.reciprocal(s, approx=False)


# --------------------------- pallas_call wrapper -----------------------------

def softmax_classify_forward(x, params, *, max_tile_b=512):
    """x: (B, hidden) f32; params: list of (W_in_out, b) for the 5 Linear layers."""
    B, H = x.shape
    n_classes = params[-1][0].shape[1]
    c_pad = pl.cdiv(n_classes, 128) * 128            # lane-dense output width

    # ---- Fold the activation-free linear chain into one affine map (f32). ----
    w_fold, b_fold = params[0]
    for (w_k, b_k) in params[1:]:
        b_fold = b_fold @ w_k + b_k
        w_fold = w_fold @ w_k
    # Lane-dense padding: zero weight columns, -1e30 bias on padded classes.
    w_pad = jnp.zeros((H, c_pad), jnp.float32).at[:, :n_classes].set(w_fold)
    b_pad = jnp.full((1, c_pad), -1e30, jnp.float32).at[0, :n_classes].set(b_fold)

    # ---- Batch tiling: multiple of 8 sublanes, >= 2 grid steps when possible
    #      (so v7x megacore actually splits work), capped at max_tile_b. ----
    bp8 = ((B + 7) // 8) * 8
    if bp8 <= 8:
        tile_b = 8
    else:
        tile_b = min(max_tile_b, ((pl.cdiv(bp8, 2) + 7) // 8) * 8)
    tile_b = max(8, (tile_b // 8) * 8)               # enforce sublane multiple
    bp = ((B + tile_b - 1) // tile_b) * tile_b
    xp = x if bp == B else jnp.pad(x, ((0, bp - B), (0, 0)))

    out = pl.pallas_call(
        _fused_head_kernel,
        out_shape=jax.ShapeDtypeStruct((bp, c_pad), jnp.float32),
        grid_spec=pltpu.PrefetchScalarGridSpec(
            num_scalar_prefetch=0,
            grid=(bp // tile_b,),
            in_specs=[
                pl.BlockSpec((tile_b, H), lambda i: (i, 0)),   # batch-tiled x
                pl.BlockSpec((H, c_pad), lambda i: (0, 0)),    # resident weight
                pl.BlockSpec((1, c_pad), lambda i: (0, 0)),    # resident bias
            ],
            out_specs=pl.BlockSpec((tile_b, c_pad), lambda i: (i, 0)),
        ),
        compiler_params=pltpu.CompilerParams(
            dimension_semantics=("parallel",),        # megacore split on v7x
            vmem_limit_bytes=32 * 1024 * 1024,        # ample: <3 MB actually used
        ),
    )(xp, w_pad, b_pad)

    return out[:B, :n_classes]


# --------------------------- params & reference ------------------------------

def init_params(key, hidden_size, n_classes):
    # PyTorch nn.Linear default init: U(-1/sqrt(fan_in), 1/sqrt(fan_in)).
    dims = [hidden_size, 864, 432, 216, 54, n_classes]
    params = []
    for i in range(len(dims) - 1):
        fan_in, fan_out = dims[i], dims[i + 1]
        key, kw, kb = jax.random.split(key, 3)
        bound = 1.0 / (fan_in ** 0.5)
        w = jax.random.uniform(kw, (fan_in, fan_out), jnp.float32, -bound, bound)
        b = jax.random.uniform(kb, (fan_out,), jnp.float32, -bound, bound)
        params.append((w, b))
    return params


def reference_forward(x, params):
    # Pure-JAX reference of the unfolded 5-layer forward (dropout = identity).
    h = x
    for (w, b) in params:
        h = h @ w + b
    m = jnp.max(h, axis=1, keepdims=True)
    e = jnp.exp(h - m)
    return e / jnp.sum(e, axis=1, keepdims=True)


# --------------------------- main --------------------------------------------

if __name__ == "__main__":
    key = jax.random.PRNGKey(0)
    kx, kp = jax.random.split(key)

    B, HIDDEN, N_CLASSES = 16, 256, 10
    x = jax.random.normal(kx, (B, HIDDEN), jnp.float32)
    params = init_params(kp, HIDDEN, N_CLASSES)

    fwd = jax.jit(functools.partial(softmax_classify_forward, max_tile_b=512))
    out = jax.block_until_ready(fwd(x, params))

    assert out.shape == (B, N_CLASSES), out.shape
    assert bool(jnp.isfinite(out).all())

    # Softmax rows must sum to 1.
    rowsum_err = float(jnp.max(jnp.abs(jnp.sum(out, axis=1) - 1.0)))
    assert rowsum_err < 1e-5, f"row-sum error {rowsum_err}"

    ref = reference_forward(x, params)
    max_err = float(jnp.max(jnp.abs(out - ref)))
    assert max_err < 5e-3, f"max abs error {max_err}"

    print("KERNEL_OK")
</pallas_src>

<mosaic_0001>
module attributes {stable_mosaic.version = 11 : i64} {
  func.func @_fused_head_kernel(%arg0: i32, %arg1: memref<8x256xf32, #tpu.memory_space<vmem>>, %arg2: memref<256x128xf32, #tpu.memory_space<vmem>>, %arg3: memref<1x128xf32, #tpu.memory_space<vmem>>, %arg4: memref<8x128xf32, #tpu.memory_space<vmem>>) attributes {dimension_semantics = [#tpu.dimension_semantics<parallel>], iteration_bounds = array<i64: 2>, scalar_prefetch = 0 : i64, scratch_operands = 0 : i64, tpu.core_type = #tpu.core_type<tc>, window_params = [{transform_indices = @transform_0, window_bounds = array<i64: 8, 256>}, {pipeline_mode = #tpu.pipeline_mode<synchronous>, transform_indices = @transform_1, window_bounds = array<i64: 256, 128>}, {pipeline_mode = #tpu.pipeline_mode<synchronous>, transform_indices = @transform_2, window_bounds = array<i64: 1, 128>}, {transform_indices = @transform_3, window_bounds = array<i64: 8, 128>}]} {
    %c0 = arith.constant 0 : index
    %c0_0 = arith.constant 0 : index
    %0 = vector.load %arg1[%c0, %c0_0] : memref<8x256xf32, #tpu.memory_space<vmem>>, vector<8x256xf32>
    %c0_1 = arith.constant 0 : index
    %c0_2 = arith.constant 0 : index
    %1 = vector.load %arg2[%c0_1, %c0_2] : memref<256x128xf32, #tpu.memory_space<vmem>>, vector<256x128xf32>
    %cst = arith.constant dense<0.000000e+00> : vector<8x128xf32>
    %2 = tpu.matmul %0, %1, %cst {dimension_numbers = #tpu.dot_dimension_numbers<[1], [0], [0], [1], [0, 0, 1, 1], [], []>} : vector<8x256xf32>, vector<256x128xf32>, vector<8x128xf32> -> vector<8x128xf32>
    %c0_3 = arith.constant 0 : index
    %c0_4 = arith.constant 0 : index
    %3 = vector.load %arg3[%c0_3, %c0_4] : memref<1x128xf32, #tpu.memory_space<vmem>>, vector<1x128xf32>
    %4 = vector.broadcast %3 : vector<1x128xf32> to vector<8x128xf32>
    %5 = arith.addf %2, %4 : vector<8x128xf32>
    %cst_5 = arith.constant dense<0xFF800000> : vector<8xf32>
    %6 = vector.multi_reduction <maximumf>, %5, %cst_5 [1] : vector<8x128xf32> to vector<8xf32>
    %7 = vector.shape_cast %6 : vector<8xf32> to vector<8x1xf32>
    %8 = vector.broadcast %7 : vector<8x1xf32> to vector<8x128xf32>
    %9 = arith.subf %5, %8 : vector<8x128xf32>
    %10 = math.exp %9 : vector<8x128xf32>
    %cst_6 = arith.constant dense<0.000000e+00> : vector<8xf32>
    %11 = vector.multi_reduction <add>, %10, %cst_6 [1] : vector<8x128xf32> to vector<8xf32>
    %12 = vector.shape_cast %11 : vector<8xf32> to vector<8x1xf32>
    %13 = tpu.reciprocal %12 : vector<8x1xf32> -> vector<8x1xf32>
    %14 = vector.broadcast %13 : vector<8x1xf32> to vector<8x128xf32>
    %15 = arith.mulf %10, %14 : vector<8x128xf32>
    %c0_7 = arith.constant 0 : index
    %c0_8 = arith.constant 0 : index
    %16 = vector.load %arg4[%c0_7, %c0_8] : memref<8x128xf32, #tpu.memory_space<vmem>>, vector<8x128xf32>
    tpu.vector_store %arg4[%c0_7, %c0_8], %15 {strides = array<i32>} : memref<8x128xf32, #tpu.memory_space<vmem>>, vector<8x128xf32>,
    return
  }
  func.func @transform_0(%arg0: i32) -> (i32, i32) {
    %c0_i32 = arith.constant 0 : i32
    %c0_i32_0 = arith.constant 0 : i32
    return %arg0, %c0_i32 : i32, i32
  }
  func.func @transform_1(%arg0: i32) -> (i32, i32) {
    %c0_i32 = arith.constant 0 : i32
    %c0_i32_0 = arith.constant 0 : i32
    %c0_i32_1 = arith.constant 0 : i32
    return %c0_i32, %c0_i32_0 : i32, i32
  }
  func.func @transform_2(%arg0: i32) -> (i32, i32) {
    %c0_i32 = arith.constant 0 : i32
    %c0_i32_0 = arith.constant 0 : i32
    %c0_i32_1 = arith.constant 0 : i32
    return %c0_i32, %c0_i32_0 : i32, i32
  }
  func.func @transform_3(%arg0: i32) -> (i32, i32) {
    %c0_i32 = arith.constant 0 : i32
    %c0_i32_0 = arith.constant 0 : i32
    return %arg0, %c0_i32 : i32, i32
  }
}

</mosaic_0001>

<bundles_post_ra>
// kernel: softmax_classify_forward.1
= control target key start
LH: loop header
LB: loop body
LE: loop exit
PB: predicated region body
PF: predicated region fallthrough
CT: control target
= control target key end

     0   :  { %8 = vsyncpa [#allocation3], 0  ;;  %s774_s0 = inlined_call_operand.vmem [shape: f32[16,256], index: 0, kind: input, shape index: {}]   ;;  %s775_s1 = inlined_call_operand.vmem [shape: f32[256,128], index: 1, kind: input, shape index: {}]   ;;  %s776_s2 = inlined_call_operand.vmem [shape: f32[1,128], index: 2, kind: input, shape index: {}]   ;;  %s777_s3 = inlined_call_operand.hbm [shape: f32[16,128], index: 3, kind: output, shape index: {}]  }
   0x1   :  { %10 = vsyncpa [#allocation3 + $0x1], 0  ;;  %s571_s12 = smov 0   ;;  %s573_s13 = smov 0  }
   0x2   :  { %s575_s14 = smov 0   ;;  %s577_s15 = smov 0  }
   0x3 LB: > { %s592_s16 = sadd.s32 4294967295, %s548_s15   ;;  %s363_s17 = sadd.s32 4294967294, %s548_s15   ;;  %s548_s15 = sphi %s577_s15, %s783_s15   ;;  %s544_s14 = sphi %s575_s14, %s782_s14   ;;  %s540_s13 = sphi %s573_s13, %s781_s13   ;;  %s536_s12 = sphi %s571_s12, %s780_s12  }
   0x4   : > { %s596_s18 = sadd.s32 1, %s548_s15   ;;  %s91_s19 = sadd.s32 1, %s544_s14 }
   0x5   : > { %s88_s20 = ssub.s32 %s548_s15, %s596_s18  ;;  %p101_p0 = scmp.ne.s32.totalorder %s544_s14, %s540_s13 }
   0x6   : > { %p89_p1 = scmp.eq.s32.totalorder %s88_s20, 0  ;;  %p102_p2 = scmp.eq.s32.totalorder %s592_s16, 1 }
   0x7   : > { %p107_p3 = scmp.ne.s32.totalorder %s540_s13, %s536_s12  ;;  %p108_p4 = scmp.eq.s32.totalorder %s363_s17, 1 }
   0x8   : > { %s607_s21 = scalar_select %p89_p1, %s544_s14, %s91_s19  }
   0x9   : > { %p609_p5 = por %p102_p2, %p101_p0  ;;  %p613_p6 = por %p108_p4, %p107_p3 }
   0xa   : > { %p366_p7 = scmp.ge.s32.totalorder %s548_s15, 1  ;;  %p140_p8 = scmp.lt.s32.totalorder %s548_s15, 3 }
   0xc   : > { %p141_p9 = pnand %p366_p7, %p140_p8 }
   0xd   : > { %v187_v0 = vld [vmem:[%s775_s1 + $0x80] sm:$0xff] (!%p141_p9)  ;;  %v188_v1 = vld [vmem:[%s775_s1 + $0x88] sm:$0xff] (!%p141_p9)  ;;  %p164_p10 = scmp.lt.s32.totalorder (!%p141_p9), %s592_s16, 1  ;;  %v189_v5 = vld [vmem:[%s775_s1 + $0x90] sm:$0xff] (!%p141_p9)  ;;  %s372_s26 = sshll.u32 (!%p141_p9), %s592_s16, 7 }
   0xe   : > { %144 = sbr.rel (%p141_p9) target bundleno = 591 (0x24f), region = 32  ;;  %v171_v2 = vld [vmem:[%s775_s1] sm:$0xff] (!%p141_p9)  ;;  %v411_v3 = vpack.c.bf16 (!%p141_p9), %v188_v1, %v187_v0  ;;  %v172_v4 = vld [vmem:[%s775_s1 + $0x8] sm:$0xff] (!%p141_p9)  ;;  %v190_v6 = vld [vmem:[%s775_s1 + $0x98] sm:$0xff] (!%p141_p9)  ;;  %s732_s4 = scalar_lea.hbm (!%p141_p9), %s777_s3, %s372_s26 }
   0xf   : > { %v413_v7 = vpack.c.bf16 (!%p141_p9), %v172_v4, %v171_v2  ;;  %v415_v8 = vpack.c.bf16 (!%p141_p9), %v190_v6, %v189_v5  ;;  %v173_v9 = vld [vmem:[%s775_s1 + $0x10] sm:$0xff] (!%p141_p9)  ;;  %v174_v10 = vld [vmem:[%s775_s1 + $0x18] sm:$0xff] (!%p141_p9)  ;;  %v191_v11 = vld [vmem:[%s775_s1 + $0xa0] sm:$0xff] (!%p141_p9) }
  0x10   : > { %412 = vmatprep.subr.bf16.mxu0 (!%p141_p9), %v411_v3  ;;  %v192_v12 = vld [vmem:[%s775_s1 + $0xa8] sm:$0xff] (!%p141_p9)  ;;  %v417_v13 = vpack.c.bf16 (!%p141_p9), %v174_v10, %v173_v9  ;;  %v175_v15 = vld [vmem:[%s775_s1 + $0x20] sm:$0xff] (!%p141_p9)  ;;  %v193_v17 = vld [vmem:[%s775_s1 + $0xb0] sm:$0xff] (!%p141_p9) }
  0x11   : > { %414 = vmatpush3.bf16.msra.mxu0 (!%p141_p9), %v413_v7  ;;  %v419_v14 = vpack.c.bf16 (!%p141_p9), %v192_v12, %v191_v11  ;;  %v176_v16 = vld [vmem:[%s775_s1 + $0x28] sm:$0xff] (!%p141_p9)  ;;  %v194_v18 = vld [vmem:[%s775_s1 + $0xb8] sm:$0xff] (!%p141_p9)  ;;  %v177_v21 = vld [vmem:[%s775_s1 + $0x30] sm:$0xff] (!%p141_p9) }
  0x12   : > { %416 = vmatprep.subr.bf16.mxu0 (!%p141_p9), %v415_v8  ;;  %v421_v19 = vpack.c.bf16 (!%p141_p9), %v176_v16, %v175_v15  ;;  %v423_v20 = vpack.c.bf16 (!%p141_p9), %v194_v18, %v193_v17  ;;  %v178_v22 = vld [vmem:[%s775_s1 + $0x38] sm:$0xff] (!%p141_p9)  ;;  %v195_v23 = vld [vmem:[%s775_s1 + $0xc0] sm:$0xff] (!%p141_p9)  ;;  %v196_v24 = vld [vmem:[%s775_s1 + $0xc8] sm:$0xff] (!%p141_p9) }
  0x13   : > { %v425_v26 = vpack.c.bf16 (!%p141_p9), %v178_v22, %v177_v21  ;;  %v427_v27 = vpack.c.bf16 (!%p141_p9), %v196_v24, %v195_v23  ;;  %v179_v28 = vld [vmem:[%s775_s1 + $0x40] sm:$0xff] (!%p141_p9)  ;;  %v180_v29 = vld [vmem:[%s775_s1 + $0x48] sm:$0xff] (!%p141_p9)  ;;  %v197_v30 = vld [vmem:[%s775_s1 + $0xd0] sm:$0xff] (!%p141_p9) }
  0x14   : > { %v198_v31 = vld [vmem:[%s775_s1 + $0xd8] sm:$0xff] (!%p141_p9)  ;;  %v429_v32 = vpack.c.bf16 (!%p141_p9), %v180_v29, %v179_v28  ;;  %v181_v34 = vld [vmem:[%s775_s1 + $0x50] sm:$0xff] (!%p141_p9)  ;;  %v199_v36 = vld [vmem:[%s775_s1 + $0xe0] sm:$0xff] (!%p141_p9) }
  0x15   : > { %s165_s24 = scalar_select %p164_p10, %s592_s16, 1  ;;  %418 = vmatpush3.bf16.msra.mxu0 %v417_v13  ;;  %v431_v33 = vpack.c.bf16 %v198_v31, %v197_v30  ;;  %v182_v35 = vld [vmem:[%s775_s1 + $0x58] sm:$0xff]  ;;  %v200_v37 = vld [vmem:[%s775_s1 + $0xe8] sm:$0xff]  ;;  %v183_v40 = vld [vmem:[%s775_s1 + $0x60] sm:$0xff] }
  0x16   : > { %420 = vmatprep.subr.bf16.mxu0 %v419_v14  ;;  %v433_v38 = vpack.c.bf16 %v182_v35, %v181_v34  ;;  %v435_v39 = vpack.c.bf16 %v200_v37, %v199_v36  ;;  %v184_v41 = vld [vmem:[%s775_s1 + $0x68] sm:$0xff]  ;;  %v201_v42 = vld [vmem:[%s775_s1 + $0xf0] sm:$0xff]  ;;  %v202_v43 = vld [vmem:[%s775_s1 + $0xf8] sm:$0xff]  ;;  %s550_s16 = smov [#allocation2]  }
  0x17   : > { %s375_s27 = sshll.u32 %s165_s24, 4  ;;  %v437_v44 = vpack.c.bf16 %v184_v41, %v183_v40  ;;  %v439_v45 = vpack.c.bf16 %v202_v43, %v201_v42  ;;  %v185_v46 = vld [vmem:[%s775_s1 + $0x70] sm:$0xff]  ;;  %v186_v47 = vld [vmem:[%s775_s1 + $0x78] sm:$0xff]  ;;  %v370_v52 = vld [vmem:[%s776_s2] ss:$0 sm:$0xff]  ;;  %s490_s7 = sshll.u32 %s550_s16, 4  ;;  %s491_s7 = int_to_ptr.vmem [resolvable:$false] %s490_s7 }
  0x18   : > { %s666_s11 = scalar_lea.vmem %s774_s0, %s375_s27  ;;  %v441_v48 = vpack.c.bf16 %v186_v47, %v185_v46  ;;  %s492_s8 = scalar_lea.vmem %s491_s7, 256 }
  0x19   : > { %v170_v25 = vld [vmem:[%s666_s11 + $0x8] sm:$0xff]  ;;  %422 = vmatpush3.bf16.msra.mxu0 %v421_v19  ;;  %v169_v49 = vld [vmem:[%s666_s11] sm:$0xff]  ;;  %s161_s11 = sand.u32 1, %s540_s13  }
  0x1a   : > { %274 = vmatprep.mubr.f32.mxu0 %v170_v25  ;;  %424 = vmatprep.subr.bf16.mxu0 %v423_v20  ;;  %s367_s25 = sshll.u32 %s161_s11, 3  ;;  %s291_s5 = scalar_lea.sflag [#allocation3], %s161_s11 }
  0x1b   : > { %s163_s28 = scalar_lea.vmem [#allocation2], %s367_s25 }
  0x1c   : > { %s304_s27 = sshll.u32 %s163_s28, 4  ;;  %s734_s27 = int_to_ptr.vmem [resolvable:$true] %s304_s27 }
  0x1d   : > { %426 = vmatpush3.bf16.msra.mxu0 %v425_v26  ;;  %s486_s6 = scalar_lea.vmem %s734_s27, 128  ;;  %p493_p0 = scmp.lt.s32.totalorder %s734_s27, %s491_s7 }
  0x1e   : > { %428 = vmatprep.subr.bf16.mxu0 %v427_v27  ;;  %p487_p11 = scmp.ne.s32.totalorder %s734_s27, %s486_s6  ;;  %p494_p1 = scmp.lt.s32.totalorder %s492_s8, %s486_s6 }
  0x20   : > { %p488_p12 = pnand %p487_p11, %p609_p5  ;;  %p495_p2 = por %p494_p1, %p493_p0 }
  0x21   : > { %430 = vmatpush3.bf16.msra.mxu0 %v429_v32 }
  0x22   : > { %432 = vmatprep.subr.bf16.mxu0 %v431_v33  ;;  %p489_p13 = pneg %p488_p12 }
  0x24   : > { %p496_p3 = pnand %p495_p2, %p489_p13 }
  0x25   : > { %434 = vmatpush3.bf16.msra.mxu0 %v433_v38 }
  0x26   : > { %436 = vmatprep.subr.bf16.mxu0 %v435_v39 }
  0x29   : > { %438 = vmatpush3.bf16.msra.mxu0 %v437_v44 }
  0x2a   : > { %440 = vmatprep.subr.bf16.mxu0 %v439_v45 }
  0x2d   : > { %442 = vmatpush3.bf16.msra.mxu0 %v441_v48 }
  0x30   : > { %275 = vmatmul.mubr.f32.vlgmr.msra.gmra.mrb[0].mxu0 %v169_v49 }
 0x103   : > { %v408_v50 = vpop.f32.mrb[0].mxu0 }
 0x104   : > { %v409_v51 = vpop.f32.mrb[1].mxu0 }
 0x105   : > { %v410_v53 = vadd.f32 %v409_v51, %v408_v50 }
 0x107   : > { %v277_v54 = vadd.f32 %v410_v53, %v370_v52 }
 0x109   : > { %280 = vmax.xlane.f32.xlu0 %v277_v54 }
 0x196   : > { %v281_v55 = vpop.xlane.xlu0 %280 }
 0x197   : > { %v282_v56 = vsub.f32 %v277_v54, %v281_v55 }
 0x199   : > { %v283_v57 = vmul.f32 1.442695, %v282_v56 }
 0x19b   : > { %482 = vpow2.f32 %v283_v57 }
 0x1a5   : > { %v483_v58 = vpop.eup %482 }
 0x1a6   : > { %285 = vadd.xlane.f32.xlu0 %v483_v58 }
 0x233   : > { %v286_v59 = vpop.xlane.xlu0 %285 }
 0x234   : > { %484 = vrcp.f32 %v286_v59 }
 0x23e   : > { %v485_v60 = vpop.eup %484 }
 0x23f   : > { %v288_v61 = vmul.f32 %v485_v60, %v483_v58 }
 0x241   : > { %289 = vst [vmem:[%s163_s28] sm:$0xff] %v288_v61 }
 0x242   : > { %499 = shalt.err (!%p496_p3)
}
 0x243   : > { %s500_s9 = scalar_lea.hbm %s732_s4, 128  ;;  %s504_s19 = scalar_lea.hbm %s777_s3, 256 }
 0x244   : > { %p501_p4 = scmp.ne.s32.totalorder %s732_s4, %s500_s9  ;;  %p505_p9 = scmp.lt.u32.totalorder %s732_s4, %s777_s3 }
 0x245   : > { %p506_p10 = scmp.lt.u32.totalorder %s504_s19, %s500_s9  ;;  %p508_p12 = scmp.lt.u32.totalorder %s500_s9, %s732_s4 }
 0x246   : > { %p502_p7 = pnand %p501_p4, %p609_p5 }
 0x247   : > { %p507_p11 = por %p506_p10, %p505_p9 }
 0x248   : > { %p503_p8 = pneg %p502_p7 }
 0x249   : > { %p509_p13 = por %p508_p12, %p507_p11 }
 0x24b   : > { %p510_p0 = pnand %p509_p13, %p503_p8 }
 0x24d   : > { %513 = shalt.err (!%p510_p0)
}
 0x24e   : > { %443 = dma.vmem_to_hbm [thread:$0]  (%p609_p5), %s734_s27, 128, %s732_s4, %s291_s5  }
 0x24f PF: > { %p449_p1 = scmp.ge.s32.totalorder %s548_s15, 2  ;;  %s316_s11 = sand.u32 1, %s536_s12  }
 0x250   : > { %s317_s25 = scalar_lea.sflag [#allocation3], %s316_s11 }
 0x251   : > { %p446_p2 = pnand %p449_p1, %p613_p6 }
 0x253   : > { %531 = dma.done.wait (!%p446_p2), %s317_s25, 128  }
 0x254   : > { %533 = vsyncadd (!%p446_p2), %s317_s25, 4294967168  ;;  %p13_p3 = scmp.ge.s32.totalorder %s596_s18, 4   ;;  %s780_s12 = smov %s540_s13 }
 0x255   : > { %s781_s13 = smov %s544_s14  ;;  %s782_s14 = smov %s607_s21 }
 0x256   : > { %s783_s15 = smov %s596_s18  ;;  %15 = sbr.rel (!%p13_p3) target bundleno = 3 (0x3), region = 67 }
 0x25d   :  { %322 = vsyncpa [#allocation3], 1 }
 0x25e   :  { %324 = vsyncpa [#allocation3 + $0x1], 1 }

</bundles_post_ra>
